<compile_context>
chip_gen: v6e
topology: v6e:2x2x1
jax: 0.10.0
libtpu: 0.0.40
codegen_flags: <defaults>
</compile_context>

<pallas_src>
import functools

import jax
import jax.numpy as jnp
from jax.experimental import pallas as pl
from jax.experimental.pallas import tpu as pltpu

_LANES = 128


def _balanced_loss_kernel(x_ref, t_ref, out_ref, acc_ref, *, neg_weight):
    i = pl.program_id(0)
    n = pl.num_programs(0)

    @pl.when(i == 0)
    def _init():
        acc_ref[0] = 0.0  # pos_num
        acc_ref[1] = 0.0  # neg_num
        acc_ref[2] = 0.0  # sum of bce over positives
        acc_ref[3] = 0.0  # sum of bce over negatives

    x = x_ref[...]
    t = t_ref[...]
    is_pos = t == 1.0
    is_neg = t == 0.0

    # Numerically-stable binary_cross_entropy_with_logits (per element):
    #   max(x, 0) - x*t + log1p(exp(-|x|))
    bce = jnp.maximum(x, 0.0) - x * t + jnp.log1p(jnp.exp(-jnp.abs(x)))

    acc_ref[0] += jnp.sum(jnp.where(is_pos, 1.0, 0.0))
    acc_ref[1] += jnp.sum(jnp.where(is_neg, 1.0, 0.0))
    acc_ref[2] += jnp.sum(jnp.where(is_pos, bce, 0.0))
    acc_ref[3] += jnp.sum(jnp.where(is_neg, bce, 0.0))

    @pl.when(i == n - 1)
    def _finalize():
        pos_num = acc_ref[0]
        neg_num = acc_ref[1]
        sum_pos = acc_ref[2]
        sum_neg = acc_ref[3]
        pos_term = jnp.where(pos_num > 0.0, sum_pos / pos_num, 0.0)
        neg_term = jnp.where(neg_num > 0.0, neg_weight * sum_neg / neg_num, 0.0)
        # weight.sum() == 1 + neg_weight when both classes are present; terms
        # corresponding to an absent class simply drop out (matches PyTorch).
        w_sum = (jnp.where(pos_num > 0.0, 1.0, 0.0)
                 + jnp.where(neg_num > 0.0, neg_weight, 0.0))
        out_ref[0, 0] = jnp.where(w_sum > 0.0, (pos_term + neg_term) / w_sum, 0.0)


def _round_up(v, m):
    return -(-v // m) * m


def balanced_loss(input_nchw, target_nchw, neg_weight=1.0, *, tile_rows=1024):
    """Pallas TPU implementation of BalancedLoss.forward (reduction='sum')."""
    assert input_nchw.shape == target_nchw.shape

    x = input_nchw.astype(jnp.float32).reshape(-1)
    t = target_nchw.astype(jnp.float32).reshape(-1)
    total = x.shape[0]

    # Lane-dense slab: (rows, 128), rows a multiple of 8 (sublane constraint).
    rows = max(8, _round_up(_round_up(total, _LANES) // _LANES, 8))
    if rows <= tile_rows:
        tile = rows
        num_tiles = 1
    else:
        tile = _round_up(tile_rows, 8)
        num_tiles = -(-rows // tile)
        rows = num_tiles * tile

    pad = rows * _LANES - total
    if pad:
        x = jnp.pad(x, (0, pad))                            # logits pad -> 0 (finite bce)
        t = jnp.pad(t, (0, pad), constant_values=-1.0)      # target pad -> neither 0 nor 1
    x2d = x.reshape(rows, _LANES)
    t2d = t.reshape(rows, _LANES)

    cost = pl.CostEstimate(
        flops=8 * total,
        transcendentals=2 * total,
        bytes_accessed=8 * total,
    )

    out = pl.pallas_call(
        functools.partial(_balanced_loss_kernel, neg_weight=float(neg_weight)),
        out_shape=jax.ShapeDtypeStruct((1, 1), jnp.float32),
        grid=(num_tiles,),
        in_specs=[
            pl.BlockSpec((tile, _LANES), lambda i: (i, 0)),
            pl.BlockSpec((tile, _LANES), lambda i: (i, 0)),
        ],
        out_specs=pl.BlockSpec(memory_space=pltpu.MemorySpace.SMEM),
        scratch_shapes=[pltpu.SMEM((4,), jnp.float32)],
        compiler_params=pltpu.CompilerParams(
            dimension_semantics=("arbitrary",),
        ),
        cost_estimate=cost,
    )(x2d, t2d)
    return out[0, 0]


def _reference(input_nchw, target_nchw, neg_weight=1.0):
    """Pure-JAX reference mirroring the PyTorch module."""
    x = input_nchw.astype(jnp.float32)
    t = target_nchw.astype(jnp.float32)
    pos = t == 1.0
    neg = t == 0.0
    pos_num = jnp.sum(pos.astype(jnp.float32))
    neg_num = jnp.sum(neg.astype(jnp.float32))
    w = jnp.zeros_like(t)
    w = jnp.where(pos, 1.0 / pos_num, w)
    w = jnp.where(neg, neg_weight / neg_num, w)
    w = w / jnp.sum(w)
    bce = jnp.maximum(x, 0.0) - x * t + jnp.log1p(jnp.exp(-jnp.abs(x)))
    return jnp.sum(w * bce)


if __name__ == "__main__":
    key = jax.random.PRNGKey(0)
    k1, k2, k3, k4 = jax.random.split(key, 4)

    # SiamFC-style response maps: small demo shape (single-tile path).
    N, C, H, W = 2, 1, 16, 16
    logits = jax.random.normal(k1, (N, C, H, W), dtype=jnp.float32)
    target = jax.random.bernoulli(k2, p=0.25, shape=(N, C, H, W)).astype(jnp.float32)

    loss = balanced_loss(logits, target, neg_weight=1.0)
    jax.block_until_ready(loss)
    ref = _reference(logits, target, neg_weight=1.0)
    assert jnp.allclose(loss, ref, rtol=1e-5, atol=1e-5), (loss, ref)

    # Slightly larger case with a small tile to exercise the multi-step
    # grid accumulation path (4 tiles) and a non-unit neg_weight.
    N2, C2, H2, W2 = 8, 1, 64, 64
    logits2 = jax.random.normal(k3, (N2, C2, H2, W2), dtype=jnp.float32)
    target2 = jax.random.bernoulli(k4, p=0.1, shape=(N2, C2, H2, W2)).astype(jnp.float32)

    loss2 = balanced_loss(logits2, target2, neg_weight=0.5, tile_rows=64)
    jax.block_until_ready(loss2)
    ref2 = _reference(logits2, target2, neg_weight=0.5)
    assert jnp.allclose(loss2, ref2, rtol=1e-5, atol=1e-5), (loss2, ref2)

    print("KERNEL_OK")
</pallas_src>

<mosaic_0001>
module attributes {stable_mosaic.version = 11 : i64} {
  func.func @_balanced_loss_kernel(%arg0: i32, %arg1: memref<8x128xf32, #tpu.memory_space<vmem>>, %arg2: memref<8x128xf32, #tpu.memory_space<vmem>>, %arg3: memref<1x1xf32, #tpu.memory_space<smem>>, %arg4: memref<4xf32, #tpu.memory_space<smem>>) attributes {dimension_semantics = [#tpu.dimension_semantics<arbitrary>], iteration_bounds = array<i64: 1>, scalar_prefetch = 0 : i64, scratch_operands = 1 : i64, tpu.core_type = #tpu.core_type<tc>, window_params = [{transform_indices = @transform_0, window_bounds = array<i64: 8, 128>}, {transform_indices = @transform_1, window_bounds = array<i64: 8, 128>}, {transform_indices = @transform_2, window_bounds = array<i64: 1, 1>}]} {
    %c0_i32 = arith.constant 0 : i32
    %0 = arith.cmpi eq, %arg0, %c0_i32 : i32
    %1 = arith.extui %0 : i1 to i32
    %c0_i32_0 = arith.constant 0 : i32
    %2 = arith.cmpi ne, %1, %c0_i32_0 : i32
    scf.if %2 {
      %cst_24 = arith.constant 0.000000e+00 : f32
      %c0_25 = arith.constant 0 : index
      %60 = memref.load %arg4[%c0_25] : memref<4xf32, #tpu.memory_space<smem>>
      memref.store %cst_24, %arg4[%c0_25] : memref<4xf32, #tpu.memory_space<smem>>
      %cst_26 = arith.constant 0.000000e+00 : f32
      %c1_27 = arith.constant 1 : index
      %61 = memref.load %arg4[%c1_27] : memref<4xf32, #tpu.memory_space<smem>>
      memref.store %cst_26, %arg4[%c1_27] : memref<4xf32, #tpu.memory_space<smem>>
      %cst_28 = arith.constant 0.000000e+00 : f32
      %c2_29 = arith.constant 2 : index
      %62 = memref.load %arg4[%c2_29] : memref<4xf32, #tpu.memory_space<smem>>
      memref.store %cst_28, %arg4[%c2_29] : memref<4xf32, #tpu.memory_space<smem>>
      %cst_30 = arith.constant 0.000000e+00 : f32
      %c3_31 = arith.constant 3 : index
      %63 = memref.load %arg4[%c3_31] : memref<4xf32, #tpu.memory_space<smem>>
      memref.store %cst_30, %arg4[%c3_31] : memref<4xf32, #tpu.memory_space<smem>>
    } else {
    }
    %c0 = arith.constant 0 : index
    %c0_1 = arith.constant 0 : index
    %3 = vector.load %arg1[%c0, %c0_1] : memref<8x128xf32, #tpu.memory_space<vmem>>, vector<8x128xf32>
    %c0_2 = arith.constant 0 : index
    %c0_3 = arith.constant 0 : index
    %4 = vector.load %arg2[%c0_2, %c0_3] : memref<8x128xf32, #tpu.memory_space<vmem>>, vector<8x128xf32>
    %cst = arith.constant 1.000000e+00 : f32
    %5 = vector.broadcast %cst : f32 to vector<8x128xf32>
    %6 = arith.cmpf oeq, %4, %5 : vector<8x128xf32>
    %cst_4 = arith.constant 0.000000e+00 : f32
    %7 = vector.broadcast %cst_4 : f32 to vector<8x128xf32>
    %8 = arith.cmpf oeq, %4, %7 : vector<8x128xf32>
    %cst_5 = arith.constant 0.000000e+00 : f32
    %9 = vector.broadcast %cst_5 : f32 to vector<8x128xf32>
    %10 = arith.maximumf %3, %9 : vector<8x128xf32>
    %11 = arith.mulf %3, %4 : vector<8x128xf32>
    %12 = arith.subf %10, %11 : vector<8x128xf32>
    %13 = math.absf %3 : vector<8x128xf32>
    %cst_6 = arith.constant 0.000000e+00 : f32
    %14 = vector.broadcast %cst_6 : f32 to vector<8x128xf32>
    %15 = arith.subf %14, %13 : vector<8x128xf32>
    %16 = math.exp %15 : vector<8x128xf32>
    %17 = math.log1p %16 : vector<8x128xf32>
    %18 = arith.addf %12, %17 : vector<8x128xf32>
    %c0_7 = arith.constant 0 : index
    %19 = memref.load %arg4[%c0_7] : memref<4xf32, #tpu.memory_space<smem>>
    %cst_8 = arith.constant 1.000000e+00 : f32
    %cst_9 = arith.constant 0.000000e+00 : f32
    %20 = vector.broadcast %cst_8 : f32 to vector<8x128xf32>
    %21 = vector.broadcast %cst_9 : f32 to vector<8x128xf32>
    %22 = arith.select %6, %20, %21 : vector<8x128xi1>, vector<8x128xf32>
    %23 = vector.shape_cast %22 : vector<8x128xf32> to vector<1x8x128xf32>
    %cst_10 = arith.constant dense<0.000000e+00> : vector<1xf32>
    %24 = vector.multi_reduction <add>, %23, %cst_10 [1, 2] : vector<1x8x128xf32> to vector<1xf32>
    %25 = vector.shape_cast %24 : vector<1xf32> to vector<1x1x1xf32>
    %26 = vector.extract %25[0, 0, 0] : f32 from vector<1x1x1xf32>
    %27 = arith.addf %19, %26 : f32
    %c0_11 = arith.constant 0 : index
    %28 = memref.load %arg4[%c0_11] : memref<4xf32, #tpu.memory_space<smem>>
    memref.store %27, %arg4[%c0_11] : memref<4xf32, #tpu.memory_space<smem>>
    %c1 = arith.constant 1 : index
    %29 = memref.load %arg4[%c1] : memref<4xf32, #tpu.memory_space<smem>>
    %cst_12 = arith.constant 1.000000e+00 : f32
    %cst_13 = arith.constant 0.000000e+00 : f32
    %30 = vector.broadcast %cst_12 : f32 to vector<8x128xf32>
    %31 = vector.broadcast %cst_13 : f32 to vector<8x128xf32>
    %32 = arith.select %8, %30, %31 : vector<8x128xi1>, vector<8x128xf32>
    %33 = vector.shape_cast %32 : vector<8x128xf32> to vector<1x8x128xf32>
    %cst_14 = arith.constant dense<0.000000e+00> : vector<1xf32>
    %34 = vector.multi_reduction <add>, %33, %cst_14 [1, 2] : vector<1x8x128xf32> to vector<1xf32>
    %35 = vector.shape_cast %34 : vector<1xf32> to vector<1x1x1xf32>
    %36 = vector.extract %35[0, 0, 0] : f32 from vector<1x1x1xf32>
    %37 = arith.addf %29, %36 : f32
    %c1_15 = arith.constant 1 : index
    %38 = memref.load %arg4[%c1_15] : memref<4xf32, #tpu.memory_space<smem>>
    memref.store %37, %arg4[%c1_15] : memref<4xf32, #tpu.memory_space<smem>>
    %c2 = arith.constant 2 : index
    %39 = memref.load %arg4[%c2] : memref<4xf32, #tpu.memory_space<smem>>
    %cst_16 = arith.constant 0.000000e+00 : f32
    %40 = vector.broadcast %cst_16 : f32 to vector<8x128xf32>
    %41 = arith.select %6, %18, %40 : vector<8x128xi1>, vector<8x128xf32>
    %42 = vector.shape_cast %41 : vector<8x128xf32> to vector<1x8x128xf32>
    %cst_17 = arith.constant dense<0.000000e+00> : vector<1xf32>
    %43 = vector.multi_reduction <add>, %42, %cst_17 [1, 2] : vector<1x8x128xf32> to vector<1xf32>
    %44 = vector.shape_cast %43 : vector<1xf32> to vector<1x1x1xf32>
    %45 = vector.extract %44[0, 0, 0] : f32 from vector<1x1x1xf32>
    %46 = arith.addf %39, %45 : f32
    %c2_18 = arith.constant 2 : index
    %47 = memref.load %arg4[%c2_18] : memref<4xf32, #tpu.memory_space<smem>>
    memref.store %46, %arg4[%c2_18] : memref<4xf32, #tpu.memory_space<smem>>
    %c3 = arith.constant 3 : index
    %48 = memref.load %arg4[%c3] : memref<4xf32, #tpu.memory_space<smem>>
    %cst_19 = arith.constant 0.000000e+00 : f32
    %49 = vector.broadcast %cst_19 : f32 to vector<8x128xf32>
    %50 = arith.select %8, %18, %49 : vector<8x128xi1>, vector<8x128xf32>
    %51 = vector.shape_cast %50 : vector<8x128xf32> to vector<1x8x128xf32>
    %cst_20 = arith.constant dense<0.000000e+00> : vector<1xf32>
    %52 = vector.multi_reduction <add>, %51, %cst_20 [1, 2] : vector<1x8x128xf32> to vector<1xf32>
    %53 = vector.shape_cast %52 : vector<1xf32> to vector<1x1x1xf32>
    %54 = vector.extract %53[0, 0, 0] : f32 from vector<1x1x1xf32>
    %55 = arith.addf %48, %54 : f32
    %c3_21 = arith.constant 3 : index
    %56 = memref.load %arg4[%c3_21] : memref<4xf32, #tpu.memory_space<smem>>
    memref.store %55, %arg4[%c3_21] : memref<4xf32, #tpu.memory_space<smem>>
    %c0_i32_22 = arith.constant 0 : i32
    %57 = arith.cmpi eq, %arg0, %c0_i32_22 : i32
    %58 = arith.extui %57 : i1 to i32
    %c0_i32_23 = arith.constant 0 : i32
    %59 = arith.cmpi ne, %58, %c0_i32_23 : i32
    scf.if %59 {
      %c0_24 = arith.constant 0 : index
      %60 = memref.load %arg4[%c0_24] : memref<4xf32, #tpu.memory_space<smem>>
      %c1_25 = arith.constant 1 : index
      %61 = memref.load %arg4[%c1_25] : memref<4xf32, #tpu.memory_space<smem>>
      %c2_26 = arith.constant 2 : index
      %62 = memref.load %arg4[%c2_26] : memref<4xf32, #tpu.memory_space<smem>>
      %c3_27 = arith.constant 3 : index
      %63 = memref.load %arg4[%c3_27] : memref<4xf32, #tpu.memory_space<smem>>
      %cst_28 = arith.constant 0.000000e+00 : f32
      %64 = arith.cmpf ogt, %60, %cst_28 : f32
      %65 = arith.divf %62, %60 : f32
      %cst_29 = arith.constant 0.000000e+00 : f32
      %66 = arith.select %64, %65, %cst_29 : f32
      %cst_30 = arith.constant 0.000000e+00 : f32
      %67 = arith.cmpf ogt, %61, %cst_30 : f32
      %cst_31 = arith.constant 1.000000e+00 : f32
      %68 = arith.mulf %cst_31, %63 : f32
      %69 = arith.divf %68, %61 : f32
      %cst_32 = arith.constant 0.000000e+00 : f32
      %70 = arith.select %67, %69, %cst_32 : f32
      %cst_33 = arith.constant 0.000000e+00 : f32
      %71 = arith.cmpf ogt, %60, %cst_33 : f32
      %cst_34 = arith.constant 1.000000e+00 : f32
      %cst_35 = arith.constant 0.000000e+00 : f32
      %72 = arith.select %71, %cst_34, %cst_35 : f32
      %cst_36 = arith.constant 0.000000e+00 : f32
      %73 = arith.cmpf ogt, %61, %cst_36 : f32
      %cst_37 = arith.constant 1.000000e+00 : f32
      %cst_38 = arith.constant 0.000000e+00 : f32
      %74 = arith.select %73, %cst_37, %cst_38 : f32
      %75 = arith.addf %72, %74 : f32
      %cst_39 = arith.constant 0.000000e+00 : f32
      %76 = arith.cmpf ogt, %75, %cst_39 : f32
      %77 = arith.addf %66, %70 : f32
      %78 = arith.divf %77, %75 : f32
      %cst_40 = arith.constant 0.000000e+00 : f32
      %79 = arith.select %76, %78, %cst_40 : f32
      %c0_41 = arith.constant 0 : index
      %c0_42 = arith.constant 0 : index
      %80 = memref.load %arg3[%c0_41, %c0_42] : memref<1x1xf32, #tpu.memory_space<smem>>
      memref.store %79, %arg3[%c0_41, %c0_42] : memref<1x1xf32, #tpu.memory_space<smem>>
    } else {
    }
    return
  }
  func.func @transform_0(%arg0: i32) -> (i32, i32) {
    %c0_i32 = arith.constant 0 : i32
    %c0_i32_0 = arith.constant 0 : i32
    return %arg0, %c0_i32 : i32, i32
  }
  func.func @transform_1(%arg0: i32) -> (i32, i32) {
    %c0_i32 = arith.constant 0 : i32
    %c0_i32_0 = arith.constant 0 : i32
    return %arg0, %c0_i32 : i32, i32
  }
  func.func @transform_2(%arg0: i32) -> (i32, i32) {
    %c0_i32 = arith.constant 0 : i32
    %c0_i32_0 = arith.constant 0 : i32
    %c0_i32_1 = arith.constant 0 : i32
    return %c0_i32, %c0_i32_0 : i32, i32
  }
}

</mosaic_0001>

<bundles_post_ra>
// kernel: tpu_custom_call.1
= control target key start
LH: loop header
LB: loop body
LE: loop exit
PB: predicated region body
PF: predicated region fallthrough
CT: control target
= control target key end

     0   :  { %7 = vsyncpa [#allocation4], 0  ;;  %s295_s0 = inlined_call_operand.hbm [shape: f32[8,128], index: 0, kind: input, shape index: {}]   ;;  %s296_s1 = inlined_call_operand.hbm [shape: f32[8,128], index: 1, kind: input, shape index: {}]   ;;  %s297_s2 = inlined_call_operand.hbm [shape: f32[1,1], index: 2, kind: output, shape index: {}]  }
   0x1   :  { %8 = vsyncpa [#allocation7], 0 }
   0x2   :  { %9 = vsyncpa [#allocation5], 0  ;;  %s259_s9 = smov [#allocation3]   ;;  %s260_s11 = smov [#allocation6]  }
   0x3   :  { %s16_s10 = sshll.u32 %s259_s9, 4  ;;  %s26_s12 = sshll.u32 %s260_s11, 4  ;;  %s17_s10 = int_to_ptr.vmem [resolvable:$true] %s16_s10  ;;  %s27_s12 = int_to_ptr.vmem [resolvable:$true] %s26_s12 }
   0x4   :  { %s213_s13 = scalar_lea.vmem %s17_s10, 128  ;;  %p218_p1 = scmp.lt.s32.totalorder %s17_s10, %s17_s10 }
   0x5   :  { %p214_p0 = scmp.ne.s32.totalorder %s17_s10, %s213_s13  ;;  %p219_p2 = scmp.lt.s32.totalorder %s213_s13, %s213_s13 }
   0x7   :  { %p220_p3 = por %p219_p2, %p218_p1 }
   0x9   :  { %p221_p4 = pnand %p220_p3, %p214_p0 }
   0xb   :  { %224 = shalt.err (!%p221_p4)
}
   0xc   :  { %19 = dma.hbm_to_vmem [thread:$0]  %s295_s0, 128, %s17_s10, [#allocation4]  }
   0xd   :  { %s233_s16 = scalar_lea.vmem %s27_s12, 128  ;;  %p238_p6 = scmp.lt.s32.totalorder %s27_s12, %s27_s12 }
   0xe   :  { %p234_p5 = scmp.ne.s32.totalorder %s27_s12, %s233_s16  ;;  %p239_p7 = scmp.lt.s32.totalorder %s233_s16, %s233_s16 }
  0x10   :  { %p240_p8 = por %p239_p7, %p238_p6 }
  0x12   :  { %p241_p9 = pnand %p240_p8, %p234_p5 }
  0x14   :  { %244 = shalt.err (!%p241_p9)
}
  0x15   :  { %29 = dma.hbm_to_vmem [thread:$0]  %s296_s1, 128, %s27_s12, [#allocation7]  }
  0x16   :  { %253 = dma.done.wait [#allocation4], 128  }
  0x17   :  { %254 = vsyncadd [#allocation4], 4294967168 }
  0x18   :  { %255 = dma.done.wait [#allocation7], 128  }
  0x19   :  { %256 = vsyncadd [#allocation7], 4294967168  ;;  %v49_v0 = vld [vmem:[#allocation6] sm:$0xff]  ;;  %v48_v1 = vld [vmem:[#allocation3] sm:$0xff]  ;;  %v261_v3 = vmov 0.0   ;;  %s262_s3 = smov [#allocation8]  }
  0x1a   :  { %vm50_vm0 = vcmp.eq.f32.partialorder %v49_v0, 1.0  ;;  %v55_v2 = vand.u32 2147483647, %v48_v1  ;;  %vm51_vm1 = vcmp.eq.f32.partialorder %v49_v0, 0.0  ;;  %v53_v12 = vmul.f32 %v49_v0, %v48_v1 }
  0x1b   :  { %v70_v4 = vsel %vm50_vm0, 1.0, %v261_v3  ;;  %v84_v6 = vsel %vm51_vm1, 1.0, %v261_v3  ;;  %v52_v13 = vmax.f32 %v48_v1, 0.0 }
  0x1c   :  { %71 = vadd.xlane.f32.xlu0 %v70_v4  ;;  %v56_v5 = vsub.f32 0.0, %v55_v2 }
  0x1d   :  { %v54_v17 = vsub.f32 %v52_v13, %v53_v12 }
  0x1e   :  { %v57_v7 = vmul.f32 1.442695, %v56_v5 }
  0x20   :  { %195 = vpow2.f32 %v57_v7  ;;  %85 = vadd.xlane.f32.xlu0 %v84_v6 }
  0x2d   :  { %v196_v8 = vpop.eup %195 }
  0x2e   :  { %v59_v9 = vadd.f32 1.0, %v196_v8  ;;  %v62_v10 = vmul.f32 -0.5, %v196_v8  ;;  %v65_v14 = vand.u32 2147483647, %v196_v8 }
  0x30   :  { %197 = vlog2.f32 %v59_v9  ;;  %v63_v11 = vadd.f32 1.0, %v62_v10  ;;  %vm66_vm2 = vcmp.lt.f32.partialorder %v65_v14, 0.0004427343 }
  0x32   :  { %v64_v15 = vmul.f32 %v196_v8, %v63_v11 }
  0x3d   :  { %v198_v16 = vpop.eup %197 }
  0x3e   :  { %v61_v18 = vmul.f32 0.6931472, %v198_v16 }
  0x40   :  { %v67_v19 = vsel %vm66_vm2, %v64_v15, %v61_v18 }
  0x41   :  { %v68_v20 = vadd.f32 %v67_v19, %v54_v17 }
  0x43   :  { %v98_v21 = vsel %vm50_vm0, %v68_v20, 0.0  ;;  %v112_v22 = vsel %vm51_vm1, %v68_v20, 0.0 }
  0x44   :  { %99 = vadd.xlane.f32.xlu1 %v98_v21 }
  0x48   :  { %113 = vadd.xlane.f32.xlu1 %v112_v22 }
  0xa5   :  { %v72_v23 = vpop.xlane.xlu0 %71 }
  0xa6   :  { %v73_v24 = vrot.slane %v72_v23, 4 }
  0xa8   :  { %v74_v25 = vadd.f32 %v73_v24, %v72_v23 }
  0xa9   :  { %v86_v26 = vpop.xlane.xlu0 %85 }
  0xaa   :  { %v75_v27 = vrot.slane %v74_v25, 2  ;;  %v87_v28 = vrot.slane %v86_v26, 4 }
  0xac   :  { %v88_v29 = vadd.f32 %v87_v28, %v86_v26  ;;  %v76_v30 = vadd.f32 %v75_v27, %v74_v25 }
  0xae   :  { %v89_v31 = vrot.slane %v88_v29, 2  ;;  %v77_v32 = vrot.slane %v76_v30, 1 }
  0xb0   :  { %v90_v33 = vadd.f32 %v89_v31, %v88_v29  ;;  %v78_v34 = vadd.f32 %v77_v32, %v76_v30 }
  0xb2   :  { %177 = vpush %v78_v34  ;;  %v91_v35 = vrot.slane %v90_v33, 1 }
  0xb4   :  { %v92_v36 = vadd.f32 %v91_v35, %v90_v33 }
  0xb6   :  { %179 = vpush %v92_v36 }
  0xcd   :  { %v100_v37 = vpop.xlane.xlu1 %99 }
  0xce   :  { %v101_v38 = vrot.slane %v100_v37, 4 }
  0xd0   :  { %v102_v39 = vadd.f32 %v101_v38, %v100_v37 }
  0xd1   :  { %v114_v40 = vpop.xlane.xlu1 %113 }
  0xd2   :  { %v103_v41 = vrot.slane %v102_v39, 2  ;;  %v115_v42 = vrot.slane %v114_v40, 4 }
  0xd4   :  { %v116_v43 = vadd.f32 %v115_v42, %v114_v40  ;;  %v104_v44 = vadd.f32 %v103_v41, %v102_v39 }
  0xd6   :  { %v117_v45 = vrot.slane %v116_v43, 2  ;;  %v105_v46 = vrot.slane %v104_v44, 1 }
  0xd8   :  { %v118_v47 = vadd.f32 %v117_v45, %v116_v43  ;;  %v106_v48 = vadd.f32 %v105_v46, %v104_v44 }
  0xda   :  { %181 = vpush %v106_v48  ;;  %v119_v49 = vrot.slane %v118_v47, 1 }
  0xdc   :  { %v120_v50 = vadd.f32 %v119_v49, %v118_v47 }
  0xde   :  { %183 = vpush %v120_v50 }
  0xe3   :  { %s178_s0 = spop %177 }
  0xe4   :  { %v133_v51 = vstv %s178_s0  ;;  %p132_p10 = scmp.gt.f32.partialorder %s178_s0, 0.0 }
  0xe5   :  { %199 = vrcp.f32 %v133_v51 }
  0xe6   :  { %s144_s19 = scalar_select %p132_p10, 1.0, 0.0 }
  0xe7   :  { %s180_s1 = spop %179 }
  0xe8   :  { %p138_p11 = scmp.gt.f32.partialorder %s180_s1, 0.0  ;;  %v139_v52 = vstv %s180_s1 }
  0xe9   :  { %201 = vrcp.f32 %v139_v52 }
  0xea   :  { %s145_s20 = scalar_select %p138_p11, 1.0, 0.0 }
  0xec   :  { %s146_s21 = sadd.f32 %s145_s20, %s144_s19 }
  0xee   :  { %v149_v53 = vstv %s146_s21  ;;  %p147_p12 = scmp.gt.f32.partialorder %s146_s21, 0.0 }
  0xef   :  { %203 = vrcp.f32 %v149_v53 }
  0xf2   :  { %v200_v54 = vpop.eup %199 }
  0xf3   :  { %185 = vpush %v200_v54 }
  0xf6   :  { %v202_v55 = vpop.eup %201 }
  0xf7   :  { %187 = vpush %v202_v55 }
  0xfc   :  { %v204_v56 = vpop.eup %203 }
  0xfd   :  { %189 = vpush %v204_v56 }
 0x10b   :  { %s182_s22 = spop %181 }
 0x10f   :  { %s184_s23 = spop %183 }
 0x124   :  { %s186_s24 = spop %185 }
 0x125   :  { %s136_s25 = smul.f32 %s186_s24, %s182_s22 }
 0x127   :  { %s299_s25 = smov (!%p132_p10, %s136_s25), 0.0 }
 0x128   :  { %s188_s26 = spop %187 }
 0x129   :  { %s142_s27 = smul.f32 %s188_s26, %s184_s23 }
 0x12b   :  { %s301_s27 = smov (!%p138_p11, %s142_s27), 0.0 }
 0x12c   :  { %s148_s28 = sadd.f32 %s301_s27, %s299_s25 }
 0x12e   :  { %s190_s29 = spop %189 }
 0x12f   :  { %s152_s30 = smul.f32 %s190_s29, %s148_s28 }
 0x131   :  { %s303_s30 = smov (!%p147_p12, %s152_s30), 0.0 }
 0x132   :  { %155 = sst [smem:[#allocation8]] %s303_s30 }
 0x133   :  { %163 = dma.smem_to_hbm %s262_s3, 16, %s297_s2, [#allocation5]  }
 0x134   :  { %257 = dma.done.wait [#allocation5], 16  }
 0x135   :  { %258 = vsyncadd [#allocation5], 4294967280 }
 0x136   :  { %167 = sfence }
 0x137   :  { %168 = vsyncpa [#allocation4], 1 }
 0x138   :  { %169 = vsyncpa [#allocation7], 1 }
 0x139   :  { %170 = vsyncpa [#allocation5], 1 }

</bundles_post_ra>
